<compile_context>
chip_gen: v6e
topology: v6e:2x2x1
jax: 0.10.0
libtpu: 0.0.40
codegen_flags: <defaults>
</compile_context>

<pallas_src>
import functools

import jax
import jax.numpy as jnp
from jax import lax
from jax.experimental import pallas as pl
from jax.experimental.pallas import tpu as pltpu


# ----------------------------- Pallas kernel ------------------------------- #
def _paramseter_kernel(x_ref, w1_ref, b1_ref, w3t_ref, b3_ref, o_ref, *,
                       bblk, th, w):
    """One row-band of `bblk` images, fully fused:
       im2col (from dx-expanded resident images) -> GEMM(K=9*Cin) -> +b,ReLU
       -> 1x1 GEMM (transposed) -> +b,ReLU -> lane-dense NCHW-flat store.

    x_ref  : (bblk, Hp*W, 3*Cin) bf16  dx-expanded padded images (resident)
    w1_ref : (9*Cin, d)          bf16  3x3 conv weights, K ordered (dy, dx, cin)
    b1_ref : (1, d)              f32
    w3t_ref: (out_nc, d)         bf16  1x1 conv weights (output-channel major)
    b3_ref : (out_nc, 1)         f32
    o_ref  : (bblk, out_nc, th*w)      NCHW-flat output band (lane-dense store)
    """
    band = th * w                                    # output pixels per image-band
    halo = band + 2 * w                              # input pixel-rows needed (dy halo)
    align = 1
    while band % (align * 2) == 0 and align < 256:
        align *= 2
    r0 = pl.program_id(1) * band                     # first input pixel-row of band
    if align > 1:
        r0 = pl.multiple_of(r0, align)

    # Build the (bblk*band, 9*Cin) GEMM operand with static slices + concats
    # only: pixels already sit on the sublane axis, the three dy taps are
    # contiguous sublane windows of one halo load, (dx, cin) live on the lanes.
    a_parts = []
    for j in range(bblk):                            # static unroll over images
        rows = x_ref[j, pl.ds(r0, halo), :]          # ((th+2)*w, 3*Cin)
        a_parts.append(jnp.concatenate(
            [rows[dy * w: dy * w + band, :] for dy in range(3)], axis=1))
    a = a_parts[0] if bblk == 1 else jnp.concatenate(a_parts, axis=0)

    # Conv1 (3x3) as ONE MXU GEMM with K = 9*Cin; no f32 accumulator RMWs.
    h = jnp.dot(a, w1_ref[...], preferred_element_type=jnp.float32)
    h = jnp.maximum(h + b1_ref[...], 0.0).astype(jnp.bfloat16)       # (M, d)

    # Conv3 (1x1) computed transposed: y_t[o, p] = sum_c w3t[o, c] * h[p, c]
    y_t = lax.dot_general(w3t_ref[...], h, (((1,), (1,)), ((), ())),
                          preferred_element_type=jnp.float32)        # (out_nc, M)
    y_t = jnp.maximum(y_t + b3_ref[...], 0.0).astype(o_ref.dtype)

    for j in range(bblk):                            # per-image lane-dense stores
        o_ref[j] = y_t[:, j * band:(j + 1) * band]


# --------------------------- parameter utilities --------------------------- #
def spectral_normalize(w, u, n_power_iterations=1, eps=1e-12):
    """torch.nn.utils.spectral_norm forward (one power iteration from the
    stored `u`; F.normalize semantics: v / max(||v||, eps))."""
    out_c = w.shape[0]
    w_mat = w.reshape(out_c, -1)

    def l2n(v):
        return v / jnp.maximum(jnp.linalg.norm(v), eps)

    v = None
    for _ in range(n_power_iterations):
        v = l2n(w_mat.T @ u)
        u = l2n(w_mat @ v)
    sigma = u @ (w_mat @ v)
    return w / sigma


def init_params(key, input_nc, out_nc, d=64):
    k1, k2, k3, k4, k5 = jax.random.split(key, 5)
    return {
        # PyTorch conv weight layouts: (out, in, kh, kw)
        "w1": 0.1 * jax.random.normal(k1, (d, input_nc, 3, 3), jnp.float32),
        "b1": 0.1 * jax.random.normal(k2, (d,), jnp.float32),
        "w3": 0.1 * jax.random.normal(k3, (out_nc, d, 1, 1), jnp.float32),
        "b3": 0.1 * jax.random.normal(k4, (out_nc,), jnp.float32),
        "u1": jax.random.normal(k5, (d,), jnp.float32),    # spectral-norm u
    }


# -------------------- generation-aware tiling / VMEM budget ----------------- #
def _ceil_to(x, m):
    return -(-x // m) * m


def _vmem_capacity_bytes():
    try:
        return int(pltpu.get_tpu_info().vmem_capacity_bytes)
    except Exception:
        return 64 * 1024 * 1024          # conservative fallback (v7x per-TC VMEM)


def _band_bytes(bblk, th, W, Hp, k9, d, out_nc, out_bytes):
    """Per-grid-step VMEM working set, *including lane/sublane padding*."""
    m = bblk * th * W
    lane = lambda n: _ceil_to(n, 128)
    x_res = bblk * _ceil_to(Hp * W, 16) * lane(k9 // 3) * 2       # resident image (bf16)
    a_op = _ceil_to(m, 16) * lane(k9) * 2                         # (M, 9*Cin) bf16 operand
    h1 = _ceil_to(m, 8) * lane(d) * 4                             # f32 GEMM-1 result
    h1b = _ceil_to(m, 16) * lane(d) * 2                           # bf16 copy for GEMM-2
    y_t = _ceil_to(out_nc, 8) * lane(m) * 4                       # transposed GEMM-2 result
    o_blk = 2 * bblk * _ceil_to(out_nc, 8) * lane(th * W) * out_bytes  # 2x-buffered out
    wts = 2 * (_ceil_to(k9, 16) * lane(d) * 2 + 8 * lane(d) * 4
               + _ceil_to(out_nc, 16) * lane(d) * 2 + _ceil_to(out_nc, 8) * 128 * 4)
    return x_res + a_op + h1 + h1b + y_t + o_blk + wts


def _choose_tiling(B, H, W, Hp, k9, d, out_nc, out_bytes):
    cap = _vmem_capacity_bytes()
    vmem_limit = min(cap // 2, 32 * 1024 * 1024)   # <=32 MiB scoped (fits v7x's 64 MiB/TC,
    budget = vmem_limit // 2                       #  above v5e's 16 MiB default when needed)

    # Largest band (divisor of H) that fits the budget; partial bands (th < H)
    # keep the store lane-dense by requiring th*W % 128 == 0.
    th = None
    for cand in range(H, 0, -1):
        if H % cand:
            continue
        if cand != H and (cand * W) % 128:
            continue
        if _band_bytes(1, cand, W, Hp, k9, d, out_nc, out_bytes) <= budget:
            th = cand
            break
    if th is None:
        # TODO(synk): fall back to a halo'd banded input block (manual DMA) when even a
        # single-row band of the dx-expanded resident image exceeds the VMEM budget.
        raise ValueError("ParamSeter Pallas kernel: image too large for the "
                         "resident-image scheme on this TPU generation")

    # Fold batch images into the GEMM M dim while the per-step GEMM is shorter
    # than one full MXU pass (256 rows), keeping >= 2 grid steps so both v7x
    # TensorCores have work, and staying inside the VMEM budget.
    bblk = 1
    for cand in range(2, B + 1):
        if B % cand:
            continue
        if bblk * th * W >= 256:
            break
        if (B // cand) * (H // th) < 2:
            break
        if _band_bytes(cand, th, W, Hp, k9, d, out_nc, out_bytes) <= budget:
            bblk = cand
    return bblk, th, vmem_limit


def _x_block_spec(bblk, hpw, k3, resident_bytes):
    """Resident dx-expanded image block; single-buffered once it is big enough
    that double-buffering would threaten v7x's 64 MiB/TC VMEM."""
    index_map = lambda bb, i: (bb, 0, 0)          # constant along the band axis
    if hasattr(pl, "Buffered") and resident_bytes > (2 << 20):
        try:
            return pl.BlockSpec((bblk, hpw, k3), index_map,
                                pipeline_mode=pl.Buffered(1))
        except TypeError:
            pass
    return pl.BlockSpec((bblk, hpw, k3), index_map)


# ------------------------------ forward pass -------------------------------- #
@functools.partial(jax.jit, static_argnames=("out_dtype",))
def paramseter_forward(x_nchw, params, out_dtype=jnp.float32):
    # out_dtype=jnp.bfloat16 halves output HBM writeback (useful on v5e) if the
    # consumer tolerates it; default float32 matches the PyTorch module.
    w1 = spectral_normalize(params["w1"], params["u1"])        # (d, Cin, 3, 3) f32
    d, out_nc = w1.shape[0], params["w3"].shape[0]

    B, Cin, H, W = x_nchw.shape
    Hp = H + 2
    k3, k9 = 3 * Cin, 9 * Cin

    # One-time wrapper-side layout plumbing (tiny XLA ops):
    #   NCHW -> NHWC, reflection pad, then a dx-expanded "im2col-lite" layout
    #   (B, Hp*W, 3*Cin): output pixels on the sublane axis, (dx, cin) on the
    #   lane axis.  The in-kernel dy taps become static sublane slices and the
    #   K = 9*Cin operand is a single lane-concat -- no per-tap reshapes.
    x = jnp.transpose(x_nchw, (0, 2, 3, 1))
    xpad = jnp.pad(x, ((0, 0), (1, 1), (1, 1), (0, 0)), mode="reflect")
    xdx = jnp.stack([xpad[:, :, dx:dx + W, :] for dx in range(3)], axis=3)
    xdx = xdx.reshape(B, Hp * W, k3).astype(jnp.bfloat16)

    # Weights in kernel layout: 2-D (9*Cin, d) bf16, K ordered (dy, dx, cin).
    w1_2d = jnp.transpose(w1, (2, 3, 1, 0)).reshape(k9, d).astype(jnp.bfloat16)
    b1_row = params["b1"].reshape(1, d).astype(jnp.float32)
    w3t = params["w3"].reshape(out_nc, d).astype(jnp.bfloat16)
    b3_col = params["b3"].reshape(out_nc, 1).astype(jnp.float32)

    out_bytes = jnp.dtype(out_dtype).itemsize
    bblk, th, vmem_limit = _choose_tiling(B, H, W, Hp, k9, d, out_nc, out_bytes)
    resident_bytes = bblk * _ceil_to(Hp * W, 16) * _ceil_to(k3, 128) * 2
    band = th * W

    kernel = functools.partial(_paramseter_kernel, bblk=bblk, th=th, w=W)

    out_flat = pl.pallas_call(
        kernel,
        out_shape=jax.ShapeDtypeStruct((B, out_nc, H * W), out_dtype),
        grid=(B // bblk, H // th),
        in_specs=[
            _x_block_spec(bblk, Hp * W, k3, resident_bytes),
            pl.BlockSpec((k9, d), lambda bb, i: (0, 0)),
            pl.BlockSpec((1, d), lambda bb, i: (0, 0)),
            pl.BlockSpec((out_nc, d), lambda bb, i: (0, 0)),
            pl.BlockSpec((out_nc, 1), lambda bb, i: (0, 0)),
        ],
        out_specs=pl.BlockSpec((bblk, out_nc, band), lambda bb, i: (bb, 0, i)),
        compiler_params=pltpu.CompilerParams(
            # No cross-step state (the K reduction lives inside one MXU GEMM),
            # so both axes are parallel -> megacore sharding even when B == 1.
            dimension_semantics=("parallel", "parallel"),
            vmem_limit_bytes=vmem_limit,
        ),
    )(xdx, w1_2d, b1_row, w3t, b3_col)

    # Output is already NCHW-flat and lane-dense; this reshape is a pure view.
    return out_flat.reshape(B, out_nc, H, W)


# ------------------------------- reference ---------------------------------- #
def paramseter_reference(x_nchw, params):
    w1 = spectral_normalize(params["w1"], params["u1"])
    xpad = jnp.pad(x_nchw, ((0, 0), (0, 0), (1, 1), (1, 1)), mode="reflect")
    y = lax.conv_general_dilated(
        xpad, w1, (1, 1), "VALID", dimension_numbers=("NCHW", "OIHW", "NCHW"))
    y = jnp.maximum(y + params["b1"][None, :, None, None], 0.0)
    y = lax.conv_general_dilated(
        y, params["w3"], (1, 1), "VALID", dimension_numbers=("NCHW", "OIHW", "NCHW"))
    y = jnp.maximum(y + params["b3"][None, :, None, None], 0.0)
    return y


# --------------------------------- main ------------------------------------- #
if __name__ == "__main__":
    key = jax.random.PRNGKey(0)
    k_x, k_p = jax.random.split(key)

    B, Cin, H, W = 2, 4, 16, 16
    d, out_nc = 64, 8

    x = jax.random.normal(k_x, (B, Cin, H, W), jnp.float32)
    params = init_params(k_p, Cin, out_nc, d)

    out = jax.block_until_ready(paramseter_forward(x, params))
    ref = paramseter_reference(x, params)

    assert out.shape == (B, out_nc, H, W)
    # bf16 MXU operands with f32 accumulation -> slightly looser tolerance.
    assert jnp.allclose(out, ref, atol=2e-2, rtol=2e-2), "mismatch vs reference"

    print("KERNEL_OK")
</pallas_src>

<mosaic_0001>
module attributes {stable_mosaic.version = 11 : i64} {
  func.func @_paramseter_kernel(%arg0: i32, %arg1: i32, %arg2: memref<1x288x12xbf16, #tpu.memory_space<vmem>>, %arg3: memref<36x64xbf16, #tpu.memory_space<vmem>>, %arg4: memref<1x64xf32, #tpu.memory_space<vmem>>, %arg5: memref<8x64xbf16, #tpu.memory_space<vmem>>, %arg6: memref<8x1xf32, #tpu.memory_space<vmem>>, %arg7: memref<1x8x256xf32, #tpu.memory_space<vmem>>) attributes {dimension_semantics = [#tpu.dimension_semantics<parallel>, #tpu.dimension_semantics<parallel>], iteration_bounds = array<i64: 2, 1>, scalar_prefetch = 0 : i64, scratch_operands = 0 : i64, tpu.core_type = #tpu.core_type<tc>, window_params = [{transform_indices = @transform_0, window_bounds = array<i64: 1, 288, 12>}, {pipeline_mode = #tpu.pipeline_mode<synchronous>, transform_indices = @transform_1, window_bounds = array<i64: 36, 64>}, {pipeline_mode = #tpu.pipeline_mode<synchronous>, transform_indices = @transform_2, window_bounds = array<i64: 1, 64>}, {pipeline_mode = #tpu.pipeline_mode<synchronous>, transform_indices = @transform_3, window_bounds = array<i64: 8, 64>}, {pipeline_mode = #tpu.pipeline_mode<synchronous>, transform_indices = @transform_4, window_bounds = array<i64: 8, 1>}, {transform_indices = @transform_5, window_bounds = array<i64: 1, 8, 256>}]} {
    %c256_i32 = arith.constant 256 : i32
    %0 = arith.muli %arg1, %c256_i32 : i32
    %1 = tpu.assume_multiple %0, 256 : i32
    %c0 = arith.constant 0 : index
    %2 = arith.index_cast %1 : i32 to index
    %c0_0 = arith.constant 0 : index
    %3 = vector.load %arg2[%c0, %2, %c0_0] : memref<1x288x12xbf16, #tpu.memory_space<vmem>>, vector<1x288x12xbf16>
    %4 = vector.shape_cast %3 : vector<1x288x12xbf16> to vector<288x12xbf16>
    %5 = vector.extract_strided_slice %4 {offsets = [0, 0], sizes = [256, 12], strides = [1, 1]} : vector<288x12xbf16> to vector<256x12xbf16>
    %6 = vector.extract_strided_slice %4 {offsets = [16, 0], sizes = [256, 12], strides = [1, 1]} : vector<288x12xbf16> to vector<256x12xbf16>
    %7 = vector.extract_strided_slice %4 {offsets = [32, 0], sizes = [256, 12], strides = [1, 1]} : vector<288x12xbf16> to vector<256x12xbf16>
    %8 = tpu.concatenate %5, %6, %7 in 1 : vector<256x12xbf16>, vector<256x12xbf16>, vector<256x12xbf16> -> vector<256x36xbf16>
    %c0_1 = arith.constant 0 : index
    %c0_2 = arith.constant 0 : index
    %9 = vector.load %arg3[%c0_1, %c0_2] : memref<36x64xbf16, #tpu.memory_space<vmem>>, vector<36x64xbf16>
    %cst = arith.constant dense<0.000000e+00> : vector<256x64xf32>
    %10 = tpu.matmul %8, %9, %cst {dimension_numbers = #tpu.dot_dimension_numbers<[1], [0], [0], [1], [0, 0, 1, 1], [], []>} : vector<256x36xbf16>, vector<36x64xbf16>, vector<256x64xf32> -> vector<256x64xf32>
    %c0_3 = arith.constant 0 : index
    %c0_4 = arith.constant 0 : index
    %11 = vector.load %arg4[%c0_3, %c0_4] : memref<1x64xf32, #tpu.memory_space<vmem>>, vector<1x64xf32>
    %12 = vector.broadcast %11 : vector<1x64xf32> to vector<256x64xf32>
    %13 = arith.addf %10, %12 : vector<256x64xf32>
    %cst_5 = arith.constant 0.000000e+00 : f32
    %14 = vector.broadcast %cst_5 : f32 to vector<256x64xf32>
    %15 = arith.maximumf %13, %14 : vector<256x64xf32>
    %16 = arith.truncf %15 : vector<256x64xf32> to vector<256x64xbf16>
    %c0_6 = arith.constant 0 : index
    %c0_7 = arith.constant 0 : index
    %17 = vector.load %arg5[%c0_6, %c0_7] : memref<8x64xbf16, #tpu.memory_space<vmem>>, vector<8x64xbf16>
    %cst_8 = arith.constant dense<0.000000e+00> : vector<8x256xf32>
    %18 = tpu.matmul %17, %16, %cst_8 {dimension_numbers = #tpu.dot_dimension_numbers<[1], [1], [0], [0], [0, 0, 1, 0], [], []>} : vector<8x64xbf16>, vector<256x64xbf16>, vector<8x256xf32> -> vector<8x256xf32>
    %c0_9 = arith.constant 0 : index
    %c0_10 = arith.constant 0 : index
    %19 = vector.load %arg6[%c0_9, %c0_10] : memref<8x1xf32, #tpu.memory_space<vmem>>, vector<8x1xf32>
    %20 = vector.broadcast %19 : vector<8x1xf32> to vector<8x256xf32>
    %21 = arith.addf %18, %20 : vector<8x256xf32>
    %cst_11 = arith.constant 0.000000e+00 : f32
    %22 = vector.broadcast %cst_11 : f32 to vector<8x256xf32>
    %23 = arith.maximumf %21, %22 : vector<8x256xf32>
    %c0_12 = arith.constant 0 : index
    %c0_13 = arith.constant 0 : index
    %c0_14 = arith.constant 0 : index
    %24 = vector.load %arg7[%c0_12, %c0_13, %c0_14] : memref<1x8x256xf32, #tpu.memory_space<vmem>>, vector<1x8x256xf32>
    %25 = vector.shape_cast %24 : vector<1x8x256xf32> to vector<8x256xf32>
    %26 = vector.shape_cast %23 : vector<8x256xf32> to vector<1x8x256xf32>
    tpu.vector_store %arg7[%c0_12, %c0_13, %c0_14], %26 {strides = array<i32>} : memref<1x8x256xf32, #tpu.memory_space<vmem>>, vector<1x8x256xf32>,
    return
  }
  func.func @transform_0(%arg0: i32, %arg1: i32) -> (i32, i32, i32) {
    %c0_i32 = arith.constant 0 : i32
    %c0_i32_0 = arith.constant 0 : i32
    %c0_i32_1 = arith.constant 0 : i32
    return %arg0, %c0_i32, %c0_i32_0 : i32, i32, i32
  }
  func.func @transform_1(%arg0: i32, %arg1: i32) -> (i32, i32) {
    %c0_i32 = arith.constant 0 : i32
    %c0_i32_0 = arith.constant 0 : i32
    %c0_i32_1 = arith.constant 0 : i32
    return %c0_i32, %c0_i32_0 : i32, i32
  }
  func.func @transform_2(%arg0: i32, %arg1: i32) -> (i32, i32) {
    %c0_i32 = arith.constant 0 : i32
    %c0_i32_0 = arith.constant 0 : i32
    %c0_i32_1 = arith.constant 0 : i32
    return %c0_i32, %c0_i32_0 : i32, i32
  }
  func.func @transform_3(%arg0: i32, %arg1: i32) -> (i32, i32) {
    %c0_i32 = arith.constant 0 : i32
    %c0_i32_0 = arith.constant 0 : i32
    %c0_i32_1 = arith.constant 0 : i32
    return %c0_i32, %c0_i32_0 : i32, i32
  }
  func.func @transform_4(%arg0: i32, %arg1: i32) -> (i32, i32) {
    %c0_i32 = arith.constant 0 : i32
    %c0_i32_0 = arith.constant 0 : i32
    %c0_i32_1 = arith.constant 0 : i32
    return %c0_i32, %c0_i32_0 : i32, i32
  }
  func.func @transform_5(%arg0: i32, %arg1: i32) -> (i32, i32, i32) {
    %c0_i32 = arith.constant 0 : i32
    %c0_i32_0 = arith.constant 0 : i32
    return %arg0, %c0_i32, %arg1 : i32, i32, i32
  }
}

</mosaic_0001>

<bundles_post_ra>
// kernel: paramseter_forward.1
= control target key start
LH: loop header
LB: loop body
LE: loop exit
PB: predicated region body
PF: predicated region fallthrough
CT: control target
= control target key end

     0   :  { %s1227_s18 = smov 0   ;;  %s1229_s19 = smov 0   ;;  %s1548_s0 = inlined_call_operand.vmem [shape: bf16[2,288,12], index: 0, kind: input, shape index: {}]   ;;  %s1549_s1 = inlined_call_operand.vmem [shape: bf16[36,64], index: 1, kind: input, shape index: {}]   ;;  %s1550_s2 = inlined_call_operand.vmem [shape: f32[1,64], index: 2, kind: input, shape index: {}]   ;;  %s1551_s3 = inlined_call_operand.vmem [shape: bf16[8,64], index: 3, kind: input, shape index: {}]   ;;  %s1552_s4 = inlined_call_operand.vmem [shape: f32[8,1], index: 4, kind: input, shape index: {}]   ;;  %s1553_s5 = inlined_call_operand.vmem [shape: f32[2,8,256], index: 5, kind: output, shape index: {}]  }
   0x1   :  { %s1231_s20 = smov 0  }
   0x2 LB: > { %s27_s21 = sadd.s32 1, %s1188_s19  ;;  %p990_p0 = scmp.ge.s32.totalorder %s1192_s20, 1  ;;  %s1192_s20 = sphi %s1231_s20, %s15_s20   ;;  %s1188_s19 = sphi %s1229_s19, %s1555_s19   ;;  %s1184_s18 = sphi %s1227_s18, %s1554_s18  }
   0x3   : > { %p29_p1 = scmp.ge.s32.totalorder %s27_s21, 2  ;;  %p201_p2 = scmp.lt.s32.totalorder %s1192_s20, 3 }
   0x5   : > { %s1557_s21 = smov (%p29_p1, %s27_s21), 0  ;;  %p202_p3 = pnand %p990_p0, %p201_p2 }
   0x6   : > { %p233_p4 = scmp.lt.s32.totalorder (!%p202_p3), %s1184_s18, 1  ;;  %s1194_s7 = smov (!%p202_p3), 24  }
   0x7   : > { %205 = sbr.rel (%p202_p3) target bundleno = 661 (0x295), region = 40  ;;  %s1195_s8 = smov (!%p202_p3), 12  }
   0xc   : > { %vm586_vm0 = vcmask 1041408   ;;  %v1166_v0 = vld [vmem:[%s1549_s1 + $0x10] ss:$0 sps:$4 sm:$0x33]   ;;  %v1167_v1 = vld [vmem:[%s1549_s1 + $0x8] sm:$0xff]   ;;  %s1559_s18 = smov (!%p233_p4, %s1184_s18), 1 }
   0xd   : > { %1111 = vmatprep.subr.msk.bf16.mxu0 %vm586_vm0, %v1166_v0  ;;  %v588_v2 = vsel %vm586_vm0, %v1166_v0, 0  ;;  %s1120_s26 = smul.u32 144, %s1559_s18  ;;  %v1169_v3 = vld [vmem:[%s1549_s1] sm:$0xff]   ;;  %vm444_vm1 = vcmask 97280   ;;  %vm493_vm2 = vcmask 195584   ;;  %vm553_vm3 = vcmask 293888  }
   0xe   : > { %1074 = vmatpush3.bf16.msra.mxu0 %v588_v2  ;;  %vm806_vm4 = vcmask 523264   ;;  %s1035_s15 = sshll.u32 %s1559_s18, 4 }
   0xf   : > { %1075 = vmatprep.subr.bf16.mxu0 %v1167_v1  ;;  %s1260_s6 = scalar_lea.vmem %s1548_s0, %s1120_s26  ;;  %s246_s22 = scalar_lea.vmem %s1553_s5, %s1035_s15 }
  0x10   : > { %v1263_v4 = vld [vmem:[%s1260_s6 + $0x10] sm:$0xff]   ;;  %v1266_v5 = vld [vmem:[%s1260_s6 + $0x8] sm:$0xff]   ;;  %v1271_v6 = vld [vmem:[%s1260_s6 + $0x18] sm:$0xff]  }
  0x11   : > { %412 = vrot.lane.b32.xlu1 %v1263_v4, %s1194_s7  ;;  %375 = vrot.lane.b32.xlu0 %v1266_v5, %s1195_s8  ;;  %v1278_v7 = vld [vmem:[%s1260_s6 + $0x20] sm:$0xff]   ;;  %v1285_v8 = vld [vmem:[%s1260_s6 + $0x28] sm:$0xff]  }
  0x12   : > { %1076 = vmatpush3.bf16.msra.mxu0 %v1167_v1  ;;  %v1292_v9 = vld [vmem:[%s1260_s6 + $0x30] sm:$0xff]   ;;  %v1299_v10 = vld [vmem:[%s1260_s6 + $0x38] sm:$0xff]   ;;  %v1306_v11 = vld [vmem:[%s1260_s6 + $0x40] sm:$0xff]  }
  0x13   : > { %1077 = vmatprep.subr.bf16.mxu0 %v1169_v3  ;;  %v1313_v12 = vld [vmem:[%s1260_s6 + $0x48] sm:$0xff]   ;;  %v1320_v13 = vld [vmem:[%s1260_s6 + $0x50] sm:$0xff]   ;;  %v1327_v14 = vld [vmem:[%s1260_s6 + $0x58] sm:$0xff]  }
  0x14   : > { %v1334_v15 = vld [vmem:[%s1260_s6 + $0x60] sm:$0xff]   ;;  %v1341_v16 = vld [vmem:[%s1260_s6 + $0x68] sm:$0xff]   ;;  %v1348_v17 = vld [vmem:[%s1260_s6 + $0x70] sm:$0xff]  }
  0x15   : > { %414 = vrot.lane.b32.xlu1 %v1271_v6, %s1194_s7  ;;  %377 = vrot.lane.b32.xlu0 %v1263_v4, %s1195_s8  ;;  %v1355_v18 = vld [vmem:[%s1260_s6 + $0x78] sm:$0xff]   ;;  %v1164_v19 = vld [vmem:[%s1260_s6 + $0x80] sm:$0xff]  }
  0x16   : > { %1078 = vmatpush3.bf16.msra.mxu0 %v1169_v3  ;;  %v1165_v20 = vld [vmem:[%s1260_s6 + $0x88] sm:$0xff]   ;;  %v1168_v21 = vld [vmem:[%s1260_s6] sm:$0xff]  }
  0x19   : > { %381 = vrot.lane.b32.xlu1 %v1278_v7, %s1195_s8  ;;  %379 = vrot.lane.b32.xlu0 %v1271_v6, %s1195_s8 }
  0x1d   : > { %418 = vrot.lane.b32.xlu1 %v1285_v8, %s1194_s7  ;;  %416 = vrot.lane.b32.xlu0 %v1278_v7, %s1194_s7 }
  0x21   : > { %385 = vrot.lane.b32.xlu1 %v1292_v9, %s1195_s8  ;;  %383 = vrot.lane.b32.xlu0 %v1285_v8, %s1195_s8 }
  0x25   : > { %422 = vrot.lane.b32.xlu1 %v1299_v10, %s1194_s7  ;;  %420 = vrot.lane.b32.xlu0 %v1292_v9, %s1194_s7 }
  0x29   : > { %389 = vrot.lane.b32.xlu1 %v1306_v11, %s1195_s8  ;;  %387 = vrot.lane.b32.xlu0 %v1299_v10, %s1195_s8 }
  0x2d   : > { %426 = vrot.lane.b32.xlu1 %v1313_v12, %s1194_s7  ;;  %424 = vrot.lane.b32.xlu0 %v1306_v11, %s1194_s7 }
  0x31   : > { %393 = vrot.lane.b32.xlu1 %v1320_v13, %s1195_s8  ;;  %391 = vrot.lane.b32.xlu0 %v1313_v12, %s1195_s8 }
  0x35   : > { %430 = vrot.lane.b32.xlu1 %v1327_v14, %s1194_s7  ;;  %428 = vrot.lane.b32.xlu0 %v1320_v13, %s1194_s7 }
  0x39   : > { %397 = vrot.lane.b32.xlu1 %v1334_v15, %s1195_s8  ;;  %395 = vrot.lane.b32.xlu0 %v1327_v14, %s1195_s8 }
  0x3d   : > { %434 = vrot.lane.b32.xlu1 %v1341_v16, %s1194_s7  ;;  %432 = vrot.lane.b32.xlu0 %v1334_v15, %s1194_s7 }
  0x41   : > { %401 = vrot.lane.b32.xlu1 %v1348_v17, %s1195_s8  ;;  %399 = vrot.lane.b32.xlu0 %v1341_v16, %s1195_s8 }
  0x45   : > { %438 = vrot.lane.b32.xlu1 %v1355_v18, %s1194_s7  ;;  %436 = vrot.lane.b32.xlu0 %v1348_v17, %s1194_s7 }
  0x49   : > { %405 = vrot.lane.b32.xlu1 %v1164_v19, %s1195_s8  ;;  %403 = vrot.lane.b32.xlu0 %v1355_v18, %s1195_s8 }
  0x4d   : > { %442 = vrot.lane.b32.xlu1 %v1165_v20, %s1194_s7  ;;  %440 = vrot.lane.b32.xlu0 %v1164_v19, %s1194_s7 }
  0x83   : > { %v413_v22 = vpop.permute.xlu1 %412  ;;  %v376_v23 = vpop.permute.xlu0 %375 }
  0x84   : > { %v447_v24 = vsel %vm444_vm1, %v1168_v21, %v376_v23 }
  0x85   : > { %v495_v25 = vsel %vm493_vm2, %v447_v24, %v413_v22  ;;  %v1437_v24 = vld [vmem:[%s1551_s3] sm:$0xf] }
  0x86   : > { %1079 = vmatprep.mubr.msk.bf16.mxu0 %vm553_vm3, %v495_v25  ;;  %1071 = vmatprep.mubr.msk.bf16.mxu1 %vm806_vm4, %v1437_v24 }
  0x87   : > { %v415_v26 = vpop.permute.xlu1 %414  ;;  %v378_v27 = vpop.permute.xlu0 %377 }
  0x88   : > { %v450_v28 = vsel %vm444_vm1, %v1266_v5, %v378_v27  ;;  %v800_v27 = vld [vmem:[%s1552_s4] sm:$0xff] }
  0x89   : > { %v497_v29 = vsel %vm493_vm2, %v450_v28, %v415_v26 }
  0x8a   : > { %1080 = vmatmul.mubr.msk.bf16.vlgmr.msra.gmra.mxu0 %vm553_vm3, %v497_v29  ;;  %v1196_v29 = vmov 0  }
  0x8b   : > { %v382_v30 = vpop.permute.xlu1 %381  ;;  %v380_v31 = vpop.permute.xlu0 %379  ;;  %1148 = vset.pattern.permute.xlu0 %v1196_v29 }
  0x8c   : > { %v456_v32 = vsel %vm444_vm1, %v1271_v6, %v382_v30  ;;  %v453_v34 = vsel %vm444_vm1, %v1263_v4, %v380_v31  ;;  %803 = vperm.xlu0 %1148, %v800_v27  }
  0x8f   : > { %v419_v33 = vpop.permute.xlu1 %418  ;;  %v417_v36 = vpop.permute.xlu0 %416 }
  0x90   : > { %v501_v35 = vsel %vm493_vm2, %v456_v32, %v419_v33  ;;  %v499_v37 = vsel %vm493_vm2, %v453_v34, %v417_v36 }
  0x91   : > { %1083 = vmatprep.mubr.msk.bf16.mxu0 %vm553_vm3, %v499_v37 }
  0x92   : > { %1084 = vmatmul.mubr.msk.bf16.gmra.mxu0 %vm553_vm3, %v501_v35 }
  0x93   : > { %v386_v38 = vpop.permute.xlu1 %385  ;;  %v384_v39 = vpop.permute.xlu0 %383 }
  0x94   : > { %v462_v40 = vsel %vm444_vm1, %v1285_v8, %v386_v38  ;;  %v459_v42 = vsel %vm444_vm1, %v1278_v7, %v384_v39 }
  0x97   : > { %v423_v41 = vpop.permute.xlu1 %422  ;;  %v421_v44 = vpop.permute.xlu0 %420 }
  0x98   : > { %v505_v43 = vsel %vm493_vm2, %v462_v40, %v423_v41  ;;  %v503_v45 = vsel %vm493_vm2, %v459_v42, %v421_v44 }
  0x99   : > { %1087 = vmatprep.mubr.msk.bf16.mxu0 %vm553_vm3, %v503_v45 }
  0x9a   : > { %1088 = vmatmul.mubr.msk.bf16.gmra.mxu0 %vm553_vm3, %v505_v43 }
  0x9b   : > { %v390_v46 = vpop.permute.xlu1 %389  ;;  %v388_v47 = vpop.permute.xlu0 %387 }
  0x9c   : > { %v468_v48 = vsel %vm444_vm1, %v1299_v10, %v390_v46  ;;  %v465_v50 = vsel %vm444_vm1, %v1292_v9, %v388_v47 }
  0x9f   : > { %v427_v49 = vpop.permute.xlu1 %426  ;;  %v425_v52 = vpop.permute.xlu0 %424 }
  0xa0   : > { %v509_v51 = vsel %vm493_vm2, %v468_v48, %v427_v49  ;;  %v507_v53 = vsel %vm493_vm2, %v465_v50, %v425_v52 }
  0xa1   : > { %1091 = vmatprep.mubr.msk.bf16.mxu0 %vm553_vm3, %v507_v53 }
  0xa2   : > { %1092 = vmatmul.mubr.msk.bf16.gmra.mxu0 %vm553_vm3, %v509_v51 }
  0xa3   : > { %v394_v54 = vpop.permute.xlu1 %393  ;;  %v392_v55 = vpop.permute.xlu0 %391 }
  0xa4   : > { %v474_v56 = vsel %vm444_vm1, %v1313_v12, %v394_v54  ;;  %v471_v58 = vsel %vm444_vm1, %v1306_v11, %v392_v55 }
  0xa7   : > { %v431_v57 = vpop.permute.xlu1 %430  ;;  %v429_v60 = vpop.permute.xlu0 %428 }
  0xa8   : > { %v513_v59 = vsel %vm493_vm2, %v474_v56, %v431_v57  ;;  %v511_v61 = vsel %vm493_vm2, %v471_v58, %v429_v60 }
  0xa9   : > { %1095 = vmatprep.mubr.msk.bf16.mxu0 %vm553_vm3, %v511_v61 }
  0xaa   : > { %1096 = vmatmul.mubr.msk.bf16.gmra.mxu0 %vm553_vm3, %v513_v59 }
  0xab   : > { %v398_v62 = vpop.permute.xlu1 %397  ;;  %v396_v63 = vpop.permute.xlu0 %395 }
  0xac   : > { %v480_v0 = vsel %vm444_vm1, %v1327_v14, %v398_v62  ;;  %v477_v2 = vsel %vm444_vm1, %v1320_v13, %v396_v63 }
  0xaf   : > { %v435_v1 = vpop.permute.xlu1 %434  ;;  %v433_v4 = vpop.permute.xlu0 %432 }
  0xb0   : > { %v517_v3 = vsel %vm493_vm2, %v480_v0, %v435_v1  ;;  %v515_v5 = vsel %vm493_vm2, %v477_v2, %v433_v4 }
  0xb1   : > { %1099 = vmatprep.mubr.msk.bf16.mxu0 %vm553_vm3, %v515_v5 }
  0xb2   : > { %1100 = vmatmul.mubr.msk.bf16.gmra.mxu0 %vm553_vm3, %v517_v3 }
  0xb3   : > { %v402_v6 = vpop.permute.xlu1 %401  ;;  %v400_v7 = vpop.permute.xlu0 %399 }
  0xb4   : > { %v486_v8 = vsel %vm444_vm1, %v1341_v16, %v402_v6  ;;  %v483_v10 = vsel %vm444_vm1, %v1334_v15, %v400_v7 }
  0xb7   : > { %v439_v9 = vpop.permute.xlu1 %438  ;;  %v437_v12 = vpop.permute.xlu0 %436 }
  0xb8   : > { %v521_v11 = vsel %vm493_vm2, %v486_v8, %v439_v9  ;;  %v519_v13 = vsel %vm493_vm2, %v483_v10, %v437_v12 }
  0xb9   : > { %1103 = vmatprep.mubr.msk.bf16.mxu0 %vm553_vm3, %v519_v13 }
  0xba   : > { %1104 = vmatmul.mubr.msk.bf16.gmra.mxu0 %vm553_vm3, %v521_v11 }
  0xbb   : > { %v406_v14 = vpop.permute.xlu1 %405  ;;  %v404_v19 = vpop.permute.xlu0 %403 }
  0xbc   : > { %v492_v20 = vsel %vm444_vm1, %v1355_v18, %v406_v14  ;;  %v489_v16 = vsel %vm444_vm1, %v1348_v17, %v404_v19  ;;  %v1444_v17 = vld [vmem:[%s1550_s2] ss:$0 sm:$0xff] }
  0xbf   : > { %v443_v21 = vpop.permute.xlu1 %442  ;;  %v441_v22 = vpop.permute.xlu0 %440 }
  0xc0   : > { %v525_v15 = vsel %vm493_vm2, %v492_v20, %v443_v21  ;;  %v523_v23 = vsel %vm493_vm2, %v489_v16, %v441_v22 }
  0xc1   : > { %1107 = vmatprep.mubr.msk.bf16.mxu0 %vm553_vm3, %v523_v23 }
  0xc2   : > { %1108 = vmatmul.mubr.msk.bf16.gmra.mxu0 %vm553_vm3, %v525_v15 }
 0x14a   : > { %v1081_v18 = vpop.f32.mrf.mxu0 }
 0x14b   : > { %v633_v26 = vadd.f32 %v1081_v18, %v1444_v17 }
 0x14c   : > { %v624_v25 = vpop.f32.mrf.mxu0 }
 0x14d   : > { %v625_v30 = vadd.f32 %v1444_v17, %v624_v25  ;;  %v753_v33 = vmax.f32 %v633_v26, 0.0 }
 0x14e   : > { %v1082_v28 = vpop.f32.mrf.mxu0 }
 0x14f   : > { %v636_v31 = vadd.f32 %v1082_v28, %v1444_v17  ;;  %v751_v37 = vmax.f32 %v625_v30, 0.0 }
 0x150   : > { %v627_v32 = vpop.f32.mrf.mxu0 }
 0x151   : > { %v754_v34 = vmax.f32 %v636_v31, 0.0  ;;  %v628_v35 = vadd.f32 %v1444_v17, %v627_v32 }
 0x152   : > { %v1085_v36 = vpop.f32.mrf.mxu0 }
 0x153   : > { %v1453_v38 = vpack.c.bf16 %v754_v34, %v753_v33  ;;  %v752_v39 = vmax.f32 %v628_v35, 0.0  ;;  %v649_v42 = vadd.f32 %v1085_v36, %v1444_v17 }
 0x154   : > { %v640_v40 = vpop.f32.mrf.mxu0 }
 0x155   : > { %v1455_v41 = vpack.c.bf16 %v752_v39, %v751_v37  ;;  %v641_v44 = vadd.f32 %v1444_v17, %v640_v40  ;;  %v757_v47 = vmax.f32 %v649_v42, 0.0 }
 0x156   : > { %v1086_v43 = vpop.f32.mrf.mxu0 }
 0x157   : > { %v652_v45 = vadd.f32 %v1086_v43, %v1444_v17  ;;  %v755_v51 = vmax.f32 %v641_v44, 0.0 }
 0x158   : > { %v643_v46 = vpop.f32.mrf.mxu0 }
 0x159   : > { %v758_v48 = vmax.f32 %v652_v45, 0.0  ;;  %v644_v49 = vadd.f32 %v1444_v17, %v643_v46 }
 0x15a   : > { %v1461_v50 = vpop.f32.mrf.mxu0 }
 0x15b   : > { %v1463_v52 = vpack.c.bf16 %v758_v48, %v757_v47  ;;  %v756_v53 = vmax.f32 %v644_v49, 0.0 }
 0x15c   : > { %v1465_v54 = vpop.f32.mrf.mxu0 }
 0x15d   : > { %v1467_v55 = vpack.c.bf16 %v756_v53, %v755_v51 }
 0x15e   : > { %v1090_v56 = vpop.f32.mrf.mxu0 }
 0x15f   : > { %v668_v51 = vadd.f32 %v1090_v56, %v1444_v17 }
 0x160   : > { %v1469_v57 = vpop.f32.mrf.mxu0 }
 0x161   : > { %v660_v56 = vadd.f32 %v1444_v17, %v1469_v57 }
 0x162   : > { %v1093_v58 = vpop.f32.mrf.mxu0 }
 0x163   : > { %v681_v18 = vadd.f32 %v1093_v58, %v1444_v17 }
 0x164   : > { %v672_v59 = vpop.f32.mrf.mxu0 }
 0x165   : > { %v765_v29 = vmax.f32 %v681_v18, 0.0  ;;  %v673_v39 = vadd.f32 %v1444_v17, %v672_v59  ;;  %v665_v59 = vadd.f32 %v1461_v50, %v1444_v17  ;;  %v657_v50 = vadd.f32 %v1444_v17, %v1465_v54 }
 0x166   : > { %v1094_v60 = vpop.f32.mrf.mxu0 }
 0x167   : > { %v684_v22 = vadd.f32 %v1094_v60, %v1444_v17  ;;  %v763_v48 = vmax.f32 %v673_v39, 0.0 }
 0x168   : > { %v675_v61 = vpop.f32.mrf.mxu0 }
 0x169   : > { %v766_v26 = vmax.f32 %v684_v22, 0.0  ;;  %v676_v32 = vadd.f32 %v1444_v17, %v675_v61  ;;  %v762_v61 = vmax.f32 %v668_v51, 0.0 }
 0x16a   : > { %v1097_v62 = vpop.f32.mrf.mxu0 }
 0x16b   : > { %v697_v0 = vadd.f32 %v1097_v62, %v1444_v17  ;;  %v790_v37 = vpack.c.bf16 %v766_v26, %v765_v29  ;;  %v764_v44 = vmax.f32 %v676_v32, 0.0  ;;  %v820_v26 = vsel %vm806_vm4, %v1463_v52, 0 }
 0x16c   : > { %v688_v63 = vpop.f32.mrf.mxu0  ;;  %v811_v52 = vsel %vm806_vm4, %v1455_v41, 0 }
 0x16d   : > { %v689_v2 = vadd.f32 %v1444_v17, %v688_v63  ;;  %v769_v5 = vmax.f32 %v697_v0, 0.0  ;;  %v832_v47 = vsel %vm806_vm4, %v790_v37, 0  ;;  %v789_v53 = vpack.c.bf16 %v764_v44, %v763_v48 }
 0x16e   : > { %v1098_v1 = vpop.f32.mrf.mxu0 }
 0x16f   : > { %v700_v3 = vadd.f32 %v1098_v1, %v1444_v17  ;;  %v767_v9 = vmax.f32 %v689_v2, 0.0  ;;  %v829_v0 = vsel %vm806_vm4, %v789_v53, 0  ;;  %v761_v1 = vmax.f32 %v665_v59, 0.0 }
 0x170   : > { %v691_v4 = vpop.f32.mrf.mxu0 }
 0x171   : > { %v770_v6 = vmax.f32 %v700_v3, 0.0  ;;  %v692_v7 = vadd.f32 %v1444_v17, %v691_v4  ;;  %v788_v3 = vpack.c.bf16 %v762_v61, %v761_v1 }
 0x172   : > { %v1475_v8 = vpop.f32.mrf.mxu0 }
 0x173   : > { %v1477_v10 = vpack.c.bf16 %v770_v6, %v769_v5  ;;  %v768_v11 = vmax.f32 %v692_v7, 0.0  ;;  %v760_v6 = vmax.f32 %v660_v56, 0.0 }
 0x174   : > { %v1479_v12 = vpop.f32.mrf.mxu0 }
 0x175   : > { %v1481_v13 = vpack.c.bf16 %v768_v11, %v767_v9  ;;  %v826_v11 = vsel %vm806_vm4, %v788_v3, 0 }
 0x176   : > { %v1102_v14 = vpop.f32.mrf.mxu0 }
 0x177   : > { %v716_v7 = vadd.f32 %v1102_v14, %v1444_v17  ;;  %v705_v14 = vadd.f32 %v1444_v17, %v1479_v12  ;;  %v804_v12 = vpop.permute.xlu0 %803 }
 0x178   : > { %v1483_v19 = vpop.f32.mrf.mxu0 }
 0x179   : > { %v774_v57 = vmax.f32 %v716_v7, 0.0  ;;  %v708_v54 = vadd.f32 %v1444_v17, %v1483_v19  ;;  %v817_v19 = vsel %vm806_vm4, %v1467_v55, 0 }
 0x17a   : > { %v1105_v20 = vpop.f32.mrf.mxu0 }
 0x17b   : > { %v729_v49 = vadd.f32 %v1105_v20, %v1444_v17  ;;  %v759_v20 = vmax.f32 %v657_v50, 0.0  ;;  %v772_v18 = vmax.f32 %v708_v54, 0.0 }
 0x17c   : > { %v720_v21 = vpop.f32.mrf.mxu0 }
 0x17d   : > { %v777_v60 = vmax.f32 %v729_v49, 0.0  ;;  %v721_v2 = vadd.f32 %v1444_v17, %v720_v21  ;;  %v713_v21 = vadd.f32 %v1475_v8, %v1444_v17  ;;  %v771_v8 = vmax.f32 %v705_v14, 0.0 }
 0x17e   : > { %v1106_v16 = vpop.f32.mrf.mxu0 }
 0x17f   : > { %v732_v45 = vadd.f32 %v1106_v16, %v1444_v17  ;;  %v775_v5 = vmax.f32 %v721_v2, 0.0  ;;  %v787_v16 = vpack.c.bf16 %v760_v6, %v759_v20 }
 0x180   : > { %v723_v15 = vpop.f32.mrf.mxu0 }
 0x181   : > { %v778_v58 = vmax.f32 %v732_v45, 0.0  ;;  %v724_v63 = vadd.f32 %v1444_v17, %v723_v15  ;;  %v773_v15 = vmax.f32 %v713_v21, 0.0 }
 0x182   : > { %v1109_v23 = vpop.f32.mrf.mxu0 }
 0x183   : > { %v745_v27 = vadd.f32 %v1109_v23, %v1444_v17  ;;  %v796_v62 = vpack.c.bf16 %v778_v58, %v777_v60  ;;  %v776_v4 = vmax.f32 %v724_v63, 0.0  ;;  %v794_v22 = vpack.c.bf16 %v774_v57, %v773_v15 }
 0x184   : > { %v736_v25 = vpop.f32.mrf.mxu0  ;;  %v823_v23 = vsel %vm806_vm4, %v787_v16, 0 }
 0x185   : > { %v737_v30 = vadd.f32 %v1444_v17, %v736_v25  ;;  %v781_v34 = vmax.f32 %v745_v27, 0.0  ;;  %v795_v9 = vpack.c.bf16 %v776_v4, %v775_v5  ;;  %v793_v25 = vpack.c.bf16 %v772_v18, %v771_v8 }
 0x186   : > { %v1110_v28 = vpop.f32.mrf.mxu0 }
 0x187   : > { %v748_v31 = vadd.f32 %v1110_v28, %v1444_v17  ;;  %v779_v40 = vmax.f32 %v737_v30, 0.0 }
 0x188   : > { %v739_v33 = vpop.f32.mrf.mxu0 }
 0x189   : > { %v782_v35 = vmax.f32 %v748_v31, 0.0  ;;  %v740_v36 = vadd.f32 %v1444_v17, %v739_v33  ;;  %v814_v17 = vsel %vm806_vm4, %v1453_v38, 0 }
 0x18b   : > { %v780_v42 = vmax.f32 %v740_v36, 0.0  ;;  %v798_v43 = vpack.c.bf16 %v782_v35, %v781_v34 }
 0x18d   : > { %v797_v46 = vpack.c.bf16 %v780_v42, %v779_v40  ;;  %1112 = vmatprep.subr.msk.bf16.mxu1 %vm806_vm4, %v798_v43 }
 0x18e   : > { %1056 = vmatpush3.bf16.xpose.msra.mxu1 %v832_v47 }
 0x18f   : > { %1113 = vmatprep.subr.msk.bf16.mxu1 %vm806_vm4, %v797_v46 }
 0x196   : > { %1058 = vmatpush3.bf16.xpose.msra.mxu1 %v829_v0 }
 0x197   : > { %1114 = vmatprep.subr.msk.bf16.mxu1 %vm806_vm4, %v796_v62 }
 0x19e   : > { %1060 = vmatpush3.bf16.xpose.msra.mxu1 %v826_v11 }
 0x19f   : > { %1115 = vmatprep.subr.msk.bf16.mxu1 %vm806_vm4, %v795_v9 }
 0x1a6   : > { %1062 = vmatpush3.bf16.xpose.msra.mxu1 %v823_v23 }
 0x1a7   : > { %1116 = vmatprep.subr.msk.bf16.mxu1 %vm806_vm4, %v794_v22 }
 0x1ae   : > { %1064 = vmatpush3.bf16.xpose.msra.mxu1 %v820_v26 }
 0x1af   : > { %1117 = vmatprep.subr.msk.bf16.mxu1 %vm806_vm4, %v793_v25 }
 0x1b6   : > { %1066 = vmatpush3.bf16.xpose.msra.mxu1 %v817_v19 }
 0x1b7   : > { %1118 = vmatprep.subr.msk.bf16.mxu1 %vm806_vm4, %v1477_v10 }
 0x1be   : > { %1068 = vmatpush3.bf16.xpose.msra.mxu1 %v814_v17 }
 0x1bf   : > { %1119 = vmatprep.subr.msk.bf16.mxu1 %vm806_vm4, %v1481_v13 }
 0x1c6   : > { %1070 = vmatpush3.bf16.xpose.msra.mxu1 %v811_v52 }
 0x1cd   : > { %1072 = vmatmul.mubr.msk.bf16.vlgmr.msra.gmra.mxu1 %vm806_vm4, %v1437_v24 }
 0x28d   : > { %v892_v55 = vpop.f32.mrf.mxu1 }
 0x28e   : > { %v893_v27 = vadd.f32 %v892_v55, %v804_v12 }
 0x28f   : > { %v894_v38 = vpop.f32.mrf.mxu1 }
 0x290   : > { %v899_v10 = vmax.f32 %v893_v27, 0.0  ;;  %v895_v28 = vadd.f32 %v894_v38, %v804_v12 }
 0x291   : > { %v896_v29 = vpop.f32.mrf.mxu1 }
 0x292   : > { %901 = vst [vmem:[%s246_s22] sm:$0xff] %v899_v10  ;;  %v900_v13 = vmax.f32 %v895_v28, 0.0 }
 0x293   : > { %v897_v30 = vpop.f32.mrf.mxu1 }
 0x294   : > { %902 = vst [vmem:[%s246_s22 + $0x8] sm:$0xff] %v900_v13 }
 0x295 PF: > { %s15_s20 = sadd.s32 1, %s1192_s20   ;;  %s1554_s18 = smov %s1188_s19 }
 0x296   : > { %p12_p5 = scmp.ge.s32.totalorder %s15_s20, 4   ;;  %s1555_s19 = smov %s1557_s21 }
 0x298   :  { %14 = sbr.rel (!%p12_p5) target bundleno = 2 (0x2), region = 71 }

</bundles_post_ra>
